<compile_context>
chip_gen: v6e
topology: v6e:2x2x1
jax: 0.10.0
libtpu: 0.0.40
codegen_flags: <defaults>
</compile_context>

<pallas_src>
import functools
import math

import jax
import jax.numpy as jnp
from jax.experimental import pallas as pl
from jax.experimental.pallas import tpu as pltpu

# Above the 32 MiB scoped default, comfortably below v7x's 64 MiB physical VMEM.
_VMEM_LIMIT_BYTES = 48 * 1024 * 1024


def _round_up(x: int, m: int) -> int:
    return (x + m - 1) // m * m


# --------------------------- linear: y = x @ W^T + b ---------------------------

def _linear_kernel(x_ref, w_ref, b_ref, o_ref):
    acc = jnp.dot(x_ref[...], w_ref[...], preferred_element_type=jnp.float32)
    o_ref[...] = (acc + b_ref[...].astype(jnp.float32)).astype(o_ref.dtype)


def linear_pallas(x, w, b=None, *, tm_max=512, out_dtype=None):
    """y = x @ w.T + b with w in PyTorch [out_features, in_features] layout."""
    *lead, din = x.shape
    dout = w.shape[0]
    m = int(math.prod(lead)) if lead else 1
    out_dtype = out_dtype or x.dtype

    x2 = x.reshape(m, din)
    w_mat = w.T                                            # [din, dout]
    if b is None:
        b = jnp.zeros((dout,), dtype=w.dtype)

    # Lane-dense output: pad feature dim to a multiple of 128 (unmasked vst),
    # slice the padding off afterwards.
    n_pad = _round_up(dout, 128)
    if n_pad != dout:
        w_mat = jnp.pad(w_mat, ((0, 0), (0, n_pad - dout)))
        b = jnp.pad(b, (0, n_pad - dout))
    b2 = b.reshape(1, n_pad)

    # M tiling (sublane aligned); pad the tail so every block is full.
    tm = min(tm_max, _round_up(m, 8))
    m_pad = _round_up(m, tm)
    if m_pad != m:
        x2 = jnp.pad(x2, ((0, m_pad - m), (0, 0)))

    bytes_io = (m_pad * din + din * n_pad + n_pad + m_pad * n_pad) * x2.dtype.itemsize
    out = pl.pallas_call(
        _linear_kernel,
        out_shape=jax.ShapeDtypeStruct((m_pad, n_pad), out_dtype),
        grid=(m_pad // tm,),
        in_specs=[
            pl.BlockSpec((tm, din), lambda i: (i, 0)),     # streamed activations
            pl.BlockSpec((din, n_pad), lambda i: (0, 0)),  # resident weight
            pl.BlockSpec((1, n_pad), lambda i: (0, 0)),    # resident bias
        ],
        out_specs=pl.BlockSpec((tm, n_pad), lambda i: (i, 0)),
        compiler_params=pltpu.CompilerParams(
            dimension_semantics=("parallel",),
            vmem_limit_bytes=_VMEM_LIMIT_BYTES,
        ),
        cost_estimate=pl.CostEstimate(
            flops=2 * m_pad * din * n_pad,
            transcendentals=0,
            bytes_accessed=bytes_io,
        ),
    )(x2, w_mat, b2)

    out = out[:m, :dout]
    return out.reshape(*lead, dout)


# ----------------------- fused scaled-dot-product attention --------------------

def _mha_kernel(q_ref, k_ref, v_ref, o_ref, m_sc, l_sc, acc_sc, *,
                scale, kv_len, kv_padded, tk):
    ki = pl.program_id(2)

    @pl.when(ki == 0)
    def _():
        m_sc[...] = jnp.full_like(m_sc, -jnp.inf)
        l_sc[...] = jnp.zeros_like(l_sc)
        acc_sc[...] = jnp.zeros_like(acc_sc)

    q = q_ref[0]                                           # (tq, dh)
    k = k_ref[0]                                           # (tk, dh)
    s = jax.lax.dot_general(q, k, (((1,), (1,)), ((), ())),
                            preferred_element_type=jnp.float32) * scale
    if kv_padded:                                          # static branch
        col = jax.lax.broadcasted_iota(jnp.int32, s.shape, 1) + ki * tk
        s = jnp.where(col < kv_len, s, -1e30)

    m_prev = m_sc[...]
    m_new = jnp.maximum(m_prev, s.max(axis=-1, keepdims=True))
    alpha = jnp.exp(m_prev - m_new)
    p = jnp.exp(s - m_new)
    l_sc[...] = alpha * l_sc[...] + p.sum(axis=-1, keepdims=True)
    acc_sc[...] = alpha * acc_sc[...] + jnp.dot(
        p.astype(v_ref.dtype), v_ref[0], preferred_element_type=jnp.float32)
    m_sc[...] = m_new

    @pl.when(ki == pl.num_programs(2) - 1)
    def _():
        o_ref[0] = (acc_sc[...] * pl.reciprocal(l_sc[...])).astype(o_ref.dtype)


def mha_pallas(q, k, v, *, tq_max=256, tk_max=512):
    """softmax(q k^T / sqrt(dh)) v for (B*H, Tq, dh) / (B*H, Tk, dh) tensors."""
    bh, tq_len, dh = q.shape
    _, tk_len, _ = k.shape

    tq = min(tq_max, _round_up(tq_len, 8))
    tk = min(tk_max, _round_up(tk_len, 8))
    tq_pad = _round_up(tq_len, tq)
    tk_pad = _round_up(tk_len, tk)
    if tq_pad != tq_len:
        q = jnp.pad(q, ((0, 0), (0, tq_pad - tq_len), (0, 0)))
    if tk_pad != tk_len:
        k = jnp.pad(k, ((0, 0), (0, tk_pad - tk_len), (0, 0)))
        v = jnp.pad(v, ((0, 0), (0, tk_pad - tk_len), (0, 0)))

    kernel = functools.partial(
        _mha_kernel,
        scale=1.0 / math.sqrt(dh),
        kv_len=tk_len,
        kv_padded=(tk_pad != tk_len),
        tk=tk,
    )
    bytes_io = (q.size + k.size + v.size + bh * tq_pad * dh) * q.dtype.itemsize
    out = pl.pallas_call(
        kernel,
        out_shape=jax.ShapeDtypeStruct((bh, tq_pad, dh), q.dtype),
        grid=(bh, tq_pad // tq, tk_pad // tk),
        in_specs=[
            pl.BlockSpec((1, tq, dh), lambda b, qi, ki: (b, qi, 0)),
            pl.BlockSpec((1, tk, dh), lambda b, qi, ki: (b, ki, 0)),
            pl.BlockSpec((1, tk, dh), lambda b, qi, ki: (b, ki, 0)),
        ],
        out_specs=pl.BlockSpec((1, tq, dh), lambda b, qi, ki: (b, qi, 0)),
        scratch_shapes=[
            pltpu.VMEM((tq, 1), jnp.float32),    # running max
            pltpu.VMEM((tq, 1), jnp.float32),    # running denominator
            pltpu.VMEM((tq, dh), jnp.float32),   # f32 output accumulator
        ],
        compiler_params=pltpu.CompilerParams(
            dimension_semantics=("parallel", "parallel", "arbitrary"),
            vmem_limit_bytes=_VMEM_LIMIT_BYTES,
        ),
        cost_estimate=pl.CostEstimate(
            flops=4 * bh * tq_pad * tk_pad * dh,
            transcendentals=bh * tq_pad * tk_pad,
            bytes_accessed=bytes_io,
        ),
    )(q, k, v)
    return out[:, :tq_len, :]


# ------------------------------- CrossAttention --------------------------------

def cross_attention_pallas(x, wq, wk, wv, w_proj, b_proj, *, num_heads, head_size,
                           context=None):
    b, t, c = x.shape
    ctx = x if context is None else context
    s = ctx.shape[1]
    d = num_heads * head_size

    q = linear_pallas(x, wq)        # (b, t, d)   no bias
    k = linear_pallas(ctx, wk)      # (b, s, d)   no bias
    v = linear_pallas(ctx, wv)      # (b, s, d)   no bias

    def split_heads(y, length):
        y = y.reshape(b, length, num_heads, head_size)
        return y.transpose(0, 2, 1, 3).reshape(b * num_heads, length, head_size)

    o = mha_pallas(split_heads(q, t), split_heads(k, s), split_heads(v, s))
    o = o.reshape(b, num_heads, t, head_size).transpose(0, 2, 1, 3).reshape(b, t, d)
    # PyTorch forward views the merged heads as (B, T, C) before proj (d == query_dim in SD).
    return linear_pallas(o, w_proj, b_proj)


def cross_attention_reference(x, wq, wk, wv, w_proj, b_proj, *, num_heads, head_size,
                              context=None):
    b, t, c = x.shape
    ctx = x if context is None else context
    q, k, v = x @ wq.T, ctx @ wk.T, ctx @ wv.T

    def split(y):
        return y.reshape(b, y.shape[1], num_heads, head_size).transpose(0, 2, 1, 3)

    qh, kh, vh = split(q), split(k), split(v)
    att = jnp.einsum("bhtd,bhsd->bhts", qh, kh) / math.sqrt(head_size)
    att = jax.nn.softmax(att, axis=-1)
    o = jnp.einsum("bhts,bhsd->bhtd", att, vh)
    o = o.transpose(0, 2, 1, 3).reshape(b, t, num_heads * head_size)
    return o @ w_proj.T + b_proj


if __name__ == "__main__":
    key = jax.random.PRNGKey(0)
    kx, kc, kq, kk, kv_key, kp, kb = jax.random.split(key, 7)

    # Small CrossAttention config: query_dim = context_dim = 32, 4 heads of size 8.
    B, T, C = 2, 8, 32
    num_heads, head_size = 4, 8
    D = num_heads * head_size            # == C, as the module's reshape requires
    S_ctx = 12                           # cross-attention context length (exercises kv masking)

    x = jax.random.normal(kx, (B, T, C), jnp.float32)
    context = jax.random.normal(kc, (B, S_ctx, C), jnp.float32)

    def init_w(k, dout, din):
        bound = 1.0 / math.sqrt(din)
        return jax.random.uniform(k, (dout, din), jnp.float32, -bound, bound)

    wq = init_w(kq, D, C)
    wk = init_w(kk, D, C)
    wv = init_w(kv_key, D, C)
    w_proj = init_w(kp, C, D)
    b_proj = jax.random.uniform(kb, (C,), jnp.float32,
                                -1.0 / math.sqrt(D), 1.0 / math.sqrt(D))

    attn = functools.partial(cross_attention_pallas, num_heads=num_heads, head_size=head_size)
    ref = functools.partial(cross_attention_reference, num_heads=num_heads, head_size=head_size)

    # Self-attention path (context=None) and cross-attention path.
    y_self = jax.block_until_ready(attn(x, wq, wk, wv, w_proj, b_proj))
    y_cross = jax.block_until_ready(attn(x, wq, wk, wv, w_proj, b_proj, context=context))

    y_self_ref = ref(x, wq, wk, wv, w_proj, b_proj)
    y_cross_ref = ref(x, wq, wk, wv, w_proj, b_proj, context=context)

    assert y_self.shape == (B, T, C), y_self.shape
    assert y_cross.shape == (B, T, C), y_cross.shape
    assert jnp.allclose(y_self, y_self_ref, atol=2e-4, rtol=2e-4), \
        float(jnp.max(jnp.abs(y_self - y_self_ref)))
    assert jnp.allclose(y_cross, y_cross_ref, atol=2e-4, rtol=2e-4), \
        float(jnp.max(jnp.abs(y_cross - y_cross_ref)))

    # bf16 path (MXU-native inputs, f32 accumulation inside the kernels).
    y_bf16 = jax.block_until_ready(
        attn(x.astype(jnp.bfloat16), wq.astype(jnp.bfloat16), wk.astype(jnp.bfloat16),
             wv.astype(jnp.bfloat16), w_proj.astype(jnp.bfloat16),
             b_proj.astype(jnp.bfloat16)))
    assert jnp.allclose(y_bf16.astype(jnp.float32), y_self_ref, atol=1e-1, rtol=1e-1)

    print("KERNEL_OK")
</pallas_src>

<mosaic_0001>
module attributes {stable_mosaic.version = 11 : i64} {
  func.func @_linear_kernel(%arg0: i32, %arg1: memref<16x32xf32, #tpu.memory_space<vmem>>, %arg2: memref<32x128xf32, #tpu.memory_space<vmem>>, %arg3: memref<1x128xf32, #tpu.memory_space<vmem>>, %arg4: memref<16x128xf32, #tpu.memory_space<vmem>>) attributes {dimension_semantics = [#tpu.dimension_semantics<parallel>], iteration_bounds = array<i64: 1>, scalar_prefetch = 0 : i64, scratch_operands = 0 : i64, tpu.core_type = #tpu.core_type<tc>, window_params = [{transform_indices = @transform_0, window_bounds = array<i64: 16, 32>}, {pipeline_mode = #tpu.pipeline_mode<synchronous>, transform_indices = @transform_1, window_bounds = array<i64: 32, 128>}, {pipeline_mode = #tpu.pipeline_mode<synchronous>, transform_indices = @transform_2, window_bounds = array<i64: 1, 128>}, {transform_indices = @transform_3, window_bounds = array<i64: 16, 128>}]} {
    %c0 = arith.constant 0 : index
    %c0_0 = arith.constant 0 : index
    %0 = vector.load %arg1[%c0, %c0_0] : memref<16x32xf32, #tpu.memory_space<vmem>>, vector<16x32xf32>
    %c0_1 = arith.constant 0 : index
    %c0_2 = arith.constant 0 : index
    %1 = vector.load %arg2[%c0_1, %c0_2] : memref<32x128xf32, #tpu.memory_space<vmem>>, vector<32x128xf32>
    %cst = arith.constant dense<0.000000e+00> : vector<16x128xf32>
    %2 = tpu.matmul %0, %1, %cst {dimension_numbers = #tpu.dot_dimension_numbers<[1], [0], [0], [1], [0, 0, 1, 1], [], []>} : vector<16x32xf32>, vector<32x128xf32>, vector<16x128xf32> -> vector<16x128xf32>
    %c0_3 = arith.constant 0 : index
    %c0_4 = arith.constant 0 : index
    %3 = vector.load %arg3[%c0_3, %c0_4] : memref<1x128xf32, #tpu.memory_space<vmem>>, vector<1x128xf32>
    %4 = vector.broadcast %3 : vector<1x128xf32> to vector<16x128xf32>
    %5 = arith.addf %2, %4 : vector<16x128xf32>
    %c0_5 = arith.constant 0 : index
    %c0_6 = arith.constant 0 : index
    %6 = vector.load %arg4[%c0_5, %c0_6] : memref<16x128xf32, #tpu.memory_space<vmem>>, vector<16x128xf32>
    tpu.vector_store %arg4[%c0_5, %c0_6], %5 {strides = array<i32>} : memref<16x128xf32, #tpu.memory_space<vmem>>, vector<16x128xf32>,
    return
  }
  func.func @transform_0(%arg0: i32) -> (i32, i32) {
    %c0_i32 = arith.constant 0 : i32
    %c0_i32_0 = arith.constant 0 : i32
    return %arg0, %c0_i32 : i32, i32
  }
  func.func @transform_1(%arg0: i32) -> (i32, i32) {
    %c0_i32 = arith.constant 0 : i32
    %c0_i32_0 = arith.constant 0 : i32
    %c0_i32_1 = arith.constant 0 : i32
    return %c0_i32, %c0_i32_0 : i32, i32
  }
  func.func @transform_2(%arg0: i32) -> (i32, i32) {
    %c0_i32 = arith.constant 0 : i32
    %c0_i32_0 = arith.constant 0 : i32
    %c0_i32_1 = arith.constant 0 : i32
    return %c0_i32, %c0_i32_0 : i32, i32
  }
  func.func @transform_3(%arg0: i32) -> (i32, i32) {
    %c0_i32 = arith.constant 0 : i32
    %c0_i32_0 = arith.constant 0 : i32
    return %arg0, %c0_i32 : i32, i32
  }
}

</mosaic_0001>

<bundles_post_ra>
// kernel: tpu_custom_call.1
= control target key start
LH: loop header
LB: loop body
LE: loop exit
PB: predicated region body
PF: predicated region fallthrough
CT: control target
= control target key end

     0   :  { %8 = vsyncpa [#allocation3], 0  ;;  %s297_s0 = inlined_call_operand.hbm [shape: f32[16,32], index: 0, kind: input, shape index: {}]   ;;  %s298_s1 = inlined_call_operand.hbm [shape: f32[32,128], index: 1, kind: input, shape index: {}]   ;;  %s299_s2 = inlined_call_operand.vmem [shape: f32[1,128], index: 2, kind: input, shape index: {}]   ;;  %s300_s3 = inlined_call_operand.hbm [shape: f32[16,128], index: 3, kind: output, shape index: {}]  }
   0x1   :  { %9 = vsyncpa [#allocation6], 0 }
   0x2   :  { %10 = vsyncpa [#allocation4], 0  ;;  %s249_s12 = smov [#allocation2]  }
   0x3   :  { %s16_s13 = sshll.u32 %s249_s12, 4  ;;  %s17_s13 = int_to_ptr.vmem [resolvable:$true] %s16_s13 }
   0x4   :  { %s191_s14 = scalar_lea.vmem %s17_s13, 256  ;;  %p196_p1 = scmp.lt.s32.totalorder %s17_s13, %s17_s13 }
   0x5   :  { %p192_p0 = scmp.ne.s32.totalorder %s17_s13, %s191_s14  ;;  %p197_p2 = scmp.lt.s32.totalorder %s191_s14, %s191_s14 }
   0x7   :  { %p198_p3 = por %p197_p2, %p196_p1 }
   0x9   :  { %p199_p4 = pnand %p198_p3, %p192_p0 }
   0xb   :  { %202 = shalt.err (!%p199_p4)
}
   0xc   :  { %s250_s15 = smov 128   ;;  %s251_s16 = smov 8  }
   0xd   :  { %22 = dma.hbm_to_vmem [thread:$0]  %s297_s0, 256, %s17_s13, [#allocation3], %s250_s15, %s250_s15, %s251_s16  }
   0xe   :  { %s252_s19 = smov [#allocation5]  }
   0xf   :  { %s28_s20 = sshll.u32 %s252_s19, 4  ;;  %s29_s20 = int_to_ptr.vmem [resolvable:$true] %s28_s20 }
  0x10   :  { %s211_s21 = scalar_lea.vmem %s29_s20, 512  ;;  %p216_p6 = scmp.lt.s32.totalorder %s29_s20, %s29_s20 }
  0x11   :  { %p212_p5 = scmp.ne.s32.totalorder %s29_s20, %s211_s21  ;;  %p217_p7 = scmp.lt.s32.totalorder %s211_s21, %s211_s21 }
  0x13   :  { %p218_p8 = por %p217_p7, %p216_p6 }
  0x15   :  { %p219_p9 = pnand %p218_p8, %p212_p5 }
  0x17   :  { %222 = shalt.err (!%p219_p9)
}
  0x18   :  { %34 = dma.hbm_to_vmem [thread:$0]  %s298_s1, 512, %s29_s20, [#allocation6], %s250_s15, %s250_s15, %s251_s16  }
  0x19   :  { %243 = dma.done.wait [#allocation3], 256  }
  0x1a   :  { %244 = vsyncadd [#allocation3], 4294967040 }
  0x1b   :  { %245 = dma.done.wait [#allocation6], 512  }
  0x1c   :  { %246 = vsyncadd [#allocation6], 4294966784  ;;  %vm56_vm0 = vcmask 261120   ;;  %v48_v0 = vld [vmem:[#allocation5 + $0x18] sm:$0xff]  ;;  %v47_v1 = vld [vmem:[#allocation5 + $0x10] sm:$0xff]  ;;  %s253_s24 = smov [#allocation7]  }
  0x1d   :  { %167 = vmatprep.subr.mxu0 %v48_v0  ;;  %v43_v2 = vld [vmem:[#allocation2] sm:$0xff]  ;;  %v46_v3 = vld [vmem:[#allocation5 + $0x8] sm:$0xff]  ;;  %v45_v4 = vld [vmem:[#allocation5] sm:$0xff]  ;;  %s145_s25 = sshll.u32 %s253_s24, 4  ;;  %s146_s25 = int_to_ptr.vmem [resolvable:$true] %s145_s25 }
  0x1e   :  { %168 = vmatpush3.msra.mxu0 %v48_v0  ;;  %175 = vmatprep.mubr.msk.f32.mxu0 %vm56_vm0, %v43_v2  ;;  %v44_v5 = vld [vmem:[#allocation2 + $0x8] sm:$0xff]  ;;  %v158_v6 = vld [vmem:[%s299_s2] ss:$0 sm:$0xff]  ;;  %s223_s26 = scalar_lea.vmem %s146_s25, 256  ;;  %p228_p11 = scmp.lt.s32.totalorder %s146_s25, %s146_s25 }
  0x1f   :  { %169 = vmatprep.subr.mxu0 %v47_v1  ;;  %p224_p10 = scmp.ne.s32.totalorder %s146_s25, %s223_s26  ;;  %p229_p12 = scmp.lt.s32.totalorder %s223_s26, %s223_s26 }
  0x20   :  { %170 = vmatpush3.msra.mxu0 %v47_v1 }
  0x21   :  { %171 = vmatprep.subr.mxu0 %v46_v3  ;;  %p230_p13 = por %p229_p12, %p228_p11 }
  0x22   :  { %172 = vmatpush3.msra.mxu0 %v46_v3 }
  0x23   :  { %173 = vmatprep.subr.mxu0 %v45_v4  ;;  %p231_p0 = pnand %p230_p13, %p224_p10 }
  0x24   :  { %174 = vmatpush3.msra.mxu0 %v45_v4 }
  0x25   :  { %176 = vmatmul.mubr.msk.f32.vlgmr.msra.gmra.mxu0 %vm56_vm0, %v44_v5 }
  0xe5   :  { %v177_v7 = vpop.f32.mrf.mxu0 }
  0xe6   :  { %v135_v8 = vadd.f32 %v177_v7, %v158_v6 }
  0xe7   :  { %v129_v9 = vpop.f32.mrf.mxu0 }
  0xe8   :  { %139 = vst [vmem:[#allocation7 + $0x8] sm:$0xff] %v135_v8  ;;  %v130_v10 = vadd.f32 %v158_v6, %v129_v9 }
  0xea   :  { %138 = vst [vmem:[#allocation7] sm:$0xff] %v130_v10 }
  0xeb   :  { %234 = shalt.err (!%p231_p0)
}
  0xec   :  { %151 = dma.vmem_to_hbm [thread:$0]  %s146_s25, 256, %s300_s3, [#allocation4], %s250_s15, %s250_s15, %s251_s16  }
  0xed   :  { %247 = dma.done.wait [#allocation4], 256  }
  0xee   :  { %248 = vsyncadd [#allocation4], 4294967040 }
  0xef   :  { %155 = vsyncpa [#allocation3], 1 }
  0xf0   :  { %156 = vsyncpa [#allocation6], 1 }
  0xf1   :  { %157 = vsyncpa [#allocation4], 1 }

</bundles_post_ra>
